<compile_context>
chip_gen: v7x
topology: tpu7x:2x2x1
jax: 0.10.0
libtpu: 0.0.40
codegen_flags: <defaults>
</compile_context>

<pallas_src>
import jax
import jax.numpy as jnp
import numpy as np
from jax.experimental import pallas as pl
from jax.experimental.pallas import tpu as pltpu

# ---- problem sizes (small, consistent with the module) ---------------------
M = 3          # num_modalities
E = 2          # num_branches = 1 + 1 (synergy, redundancy)
B = 8          # batch
H = 32         # per-modality hidden_dim
C = 16         # num_classes (fusion model output dim)
H_RW = 32      # hidden_dim_rw
TEMP = 1.0     # temperature_rw
EPS = 1e-12    # F.normalize eps

VC = (M + 1) * C              # 64  lanes per expert (variants x classes)
LOG_W = E * VC                # 128 packed logits width (lane dense)
NB = E * (M + 1)              # 8   number of (expert, variant) blocks
K_PAD = 128                   # padded contraction dim (M*H + 1 -> 128)
QW = 2 * LOG_W + H_RW         # 288 aux-dot contraction dim
NBIG = QW + E                 # 290 fused-dot output width
SW = 3 * NB + E               # 26  aux-dot output width
OUT_W = 256                   # single lane-dense output slab width


def imoe_kernel(x_ref, wbig_ref, s_ref, out_ref):
    # Single fused bf16 MXU dot (f32 accumulation).  y columns:
    #   [0:128)   per-(expert,variant) logits (bias folded via the 1-column)
    #   [128:256) anchor-replicated logits (for the cosine losses)
    #   [256:288) reweighting layer-1 pre-activation (b1 folded in)
    #   [288:290) b2 / temperature
    y = jnp.dot(x_ref[...], wbig_ref[...], preferred_element_type=jnp.float32)
    slab = y[:, 0:LOG_W]
    abcast = y[:, LOG_W:2 * LOG_W]
    h = jnp.maximum(y[:, 2 * LOG_W:QW], 0.0)
    b2row = y[:, QW:QW + E]

    # Single auxiliary f32 dot: segmented per-16-lane-block reductions for the
    # cosine losses plus the reweighting layer-2 matmul.  stats columns:
    #   [0:8)  anchor.variant   [8:16) ||variant||^2
    #   [16:24) ||anchor||^2 (pre-replicated)   [24:26) h @ W2 / T
    q = jnp.concatenate([slab * slab, slab * abcast, h], axis=1)   # [B, 288]
    stats = jnp.dot(q, s_ref[...], preferred_element_type=jnp.float32)
    numer = stats[:, 0:NB]
    ssv = stats[:, NB:2 * NB]
    ssa = stats[:, 2 * NB:3 * NB]

    # interaction weights (exact softmax so they sum to 1)
    wlog = stats[:, 3 * NB:3 * NB + E] + b2row
    ew = jnp.exp(wlog - jnp.max(wlog, axis=1, keepdims=True))
    weights = ew / jnp.sum(ew, axis=1, keepdims=True)

    # weighted logits from each expert's anchor (full-fusion) block
    wl = weights[:, 0:1] * slab[:, 0:C]
    for e in range(1, E):
        wl = wl + weights[:, e:e + 1] * slab[:, e * VC:e * VC + C]

    # synergy / redundancy losses from per-block cosine similarities
    eps2 = EPS * EPS
    cos = (numer * jax.lax.rsqrt(jnp.maximum(ssv, eps2))
                 * jax.lax.rsqrt(jnp.maximum(ssa, eps2)))           # [B, 8]
    inv_mb = 1.0 / (M * B)
    syn = jnp.sum(cos[:, (E - 2) * (M + 1) + 1:(E - 1) * (M + 1)]) * inv_mb
    red = 1.0 - jnp.sum(cos[:, (E - 1) * (M + 1) + 1:E * (M + 1)]) * inv_mb

    # single lane-dense output slab: [logits | weighted_logits | weights |
    # syn | red | zero pad] -> one unmasked store, one writeback DMA.
    ones_col = jnp.ones((B, 1), jnp.float32)
    pad = jnp.zeros((B, OUT_W - LOG_W - C - E - 2), jnp.float32)
    out_ref[...] = jnp.concatenate(
        [slab, wl, weights, syn * ones_col, red * ones_col, pad], axis=1)


def pack_params(We, be, W1, b1, W2, b2):
    """Pack module parameters into the two constant kernel operands.
    Runs ONCE at load time (outside the per-call jit)."""
    We = np.asarray(We, np.float32)
    be = np.asarray(be, np.float32)
    W1 = np.asarray(W1, np.float32)
    b1 = np.asarray(b1, np.float32)
    W2 = np.asarray(W2, np.float32)
    b2 = np.asarray(b2, np.float32)

    wbig = np.zeros((K_PAD, NBIG), np.float32)
    brow = M * H                                    # row hit by the 1-column
    for e in range(E):
        for v in range(M + 1):
            col = e * VC + v * C
            for m in range(M):
                if v != m + 1:                      # variant v drops modality v-1
                    wbig[m * H:(m + 1) * H, col:col + C] = We[e, m]
            wbig[brow, col:col + C] = be[e, 0]
    # anchor-replicated copy: every variant slot of expert e repeats its v=0 block
    for e in range(E):
        anchor = wbig[:, e * VC:e * VC + C].copy()
        for v in range(M + 1):
            col = LOG_W + e * VC + v * C
            wbig[:, col:col + C] = anchor
    for m in range(M):                              # reweighting layer 1
        wbig[m * H:(m + 1) * H, 2 * LOG_W:2 * LOG_W + H_RW] = W1[m]
    wbig[brow, 2 * LOG_W:2 * LOG_W + H_RW] = b1[0]
    wbig[brow, QW:QW + E] = b2[0] / TEMP            # b2/T via the bias row

    s_all = np.zeros((QW, SW), np.float32)
    for l in range(LOG_W):
        e, rem = divmod(l, VC)
        v = rem // C
        j = e * (M + 1) + v
        s_all[l, NB + j] = 1.0                      # ||variant||^2 per block
        s_all[LOG_W + l, j] = 1.0                   # anchor . variant per block
        if v == 0:                                  # ||anchor||^2, replicated
            for vv in range(M + 1):
                s_all[l, 2 * NB + e * (M + 1) + vv] = 1.0
    s_all[2 * LOG_W:QW, 3 * NB:3 * NB + E] = W2 / TEMP
    return jnp.asarray(wbig, jnp.bfloat16), jnp.asarray(s_all, jnp.float32)


@jax.jit
def synergy_redundancy_imoe(x, wbig, s_all):
    """x: [M, B, H] stacked modality features; wbig/s_all from pack_params().
    Returns (all_variant_logits [E, M+1, B, C], interaction_weights [B, E],
             weighted_logits [B, C], interaction_losses [2],
             expert_gate_losses [E])."""
    x2d = jnp.transpose(x, (1, 0, 2)).reshape(B, M * H)
    x_aug = jnp.concatenate(
        [x2d, jnp.ones((B, 1), x.dtype),
         jnp.zeros((B, K_PAD - M * H - 1), x.dtype)],
        axis=1).astype(jnp.bfloat16)

    out = pl.pallas_call(
        imoe_kernel,
        grid_spec=pl.GridSpec(
            grid=(1,),   # fixed-overhead bound at B=8; tile over batch rows
                         # ("parallel") only if the production batch grows.
            in_specs=[
                pl.BlockSpec((B, K_PAD), lambda i: (0, 0)),       # x_aug bf16
                pl.BlockSpec((K_PAD, NBIG), lambda i: (0, 0)),    # fused W bf16
                pl.BlockSpec((QW, SW), lambda i: (0, 0)),         # aux matrix
            ],
            out_specs=pl.BlockSpec((B, OUT_W), lambda i: (0, 0)),
        ),
        out_shape=jax.ShapeDtypeStruct((B, OUT_W), jnp.float32),
        compiler_params=pltpu.CompilerParams(
            dimension_semantics=("arbitrary",)),
    )(x_aug, wbig, s_all)

    all_logits = out[:, :LOG_W].reshape(B, E, M + 1, C).transpose(1, 2, 0, 3)
    weighted_logits = out[:, LOG_W:LOG_W + C]
    weights = out[:, LOG_W + C:LOG_W + C + E]
    losses = out[0, LOG_W + C + E:LOG_W + C + E + 2]
    # TODO(synk): InteractionExpert's sparse-gate loss is undefined in the
    # reference module; expert_gate_losses are emitted as zeros.
    gate_losses = jnp.zeros((E,), jnp.float32)
    return all_logits, weights, weighted_logits, losses, gate_losses


def reference(x, We, be, W1, b1, W2, b2):
    """Pure-JAX f32 reference of the modeled forward pass."""
    contr = jnp.einsum("mbh,emhc->embc", x, We)                 # [E, M, B, C]
    full = contr.sum(axis=1) + be                               # [E, B, C]
    variants = jnp.concatenate(
        [full[:, None], full[:, None] - contr], axis=1)         # [E, M+1, B, C]

    def l2n(v):
        n = jnp.sqrt(jnp.sum(v * v, axis=1, keepdims=True))
        return v / jnp.maximum(n, EPS)

    syn_a = l2n(variants[E - 2, 0])
    syn = jnp.mean(jnp.stack(
        [jnp.mean(jnp.sum(syn_a * l2n(variants[E - 2, m + 1]), axis=1))
         for m in range(M)]))
    red_a = l2n(variants[E - 1, 0])
    red = jnp.mean(jnp.stack(
        [jnp.mean(1.0 - jnp.sum(red_a * l2n(variants[E - 1, m + 1]), axis=1))
         for m in range(M)]))

    h = jax.nn.relu(jnp.einsum("mbh,mhr->br", x, W1) + b1)
    wlog = (h @ W2 + b2) / TEMP
    weights = jax.nn.softmax(wlog, axis=1)
    wl = jnp.einsum("be,ebc->bc", weights, full)
    return variants, weights, wl, jnp.stack([syn, red])


if __name__ == "__main__":
    key = jax.random.PRNGKey(0)
    kx, kwe, kbe, kw1, kb1, kw2, kb2 = jax.random.split(key, 7)

    x = jax.random.normal(kx, (M, B, H), dtype=jnp.float32)
    We = 0.1 * jax.random.normal(kwe, (E, M, H, C), dtype=jnp.float32)
    be = 0.1 * jax.random.normal(kbe, (E, 1, C), dtype=jnp.float32)
    W1 = 0.1 * jax.random.normal(kw1, (M, H, H_RW), dtype=jnp.float32)
    b1 = 0.1 * jax.random.normal(kb1, (1, H_RW), dtype=jnp.float32)
    W2 = 0.1 * jax.random.normal(kw2, (H_RW, E), dtype=jnp.float32)
    b2 = 0.1 * jax.random.normal(kb2, (1, E), dtype=jnp.float32)

    # pack once at load time (feedback #7): no per-call packing inside the jit
    wbig, s_all = pack_params(We, be, W1, b1, W2, b2)

    outs = synergy_redundancy_imoe(x, wbig, s_all)
    outs = jax.block_until_ready(outs)
    all_logits, weights, weighted_logits, losses, gate_losses = outs

    # sanity check against a pure-JAX f32 reference (bf16 MXU inputs keep the
    # result within 2e-2 at these magnitudes)
    ref_logits, ref_w, ref_wl, ref_losses = reference(x, We, be, W1, b1, W2, b2)
    np.testing.assert_allclose(np.asarray(all_logits), np.asarray(ref_logits),
                               rtol=2e-2, atol=2e-2)
    np.testing.assert_allclose(np.asarray(weights), np.asarray(ref_w),
                               rtol=2e-2, atol=2e-2)
    np.testing.assert_allclose(np.asarray(weighted_logits), np.asarray(ref_wl),
                               rtol=2e-2, atol=2e-2)
    np.testing.assert_allclose(np.asarray(losses), np.asarray(ref_losses),
                               rtol=2e-2, atol=2e-2)
    assert gate_losses.shape == (E,)

    print("KERNEL_OK")
</pallas_src>

<mosaic_0001>
module attributes {stable_mosaic.version = 11 : i64} {
  func.func @imoe_kernel(%arg0: i32, %arg1: memref<8x128xbf16, #tpu.memory_space<vmem>>, %arg2: memref<128x290xbf16, #tpu.memory_space<vmem>>, %arg3: memref<288x26xf32, #tpu.memory_space<vmem>>, %arg4: memref<8x256xf32, #tpu.memory_space<vmem>>) attributes {dimension_semantics = [#tpu.dimension_semantics<arbitrary>], iteration_bounds = array<i64: 1>, scalar_prefetch = 0 : i64, scratch_operands = 0 : i64, tpu.core_type = #tpu.core_type<tc>, window_params = [{pipeline_mode = #tpu.pipeline_mode<synchronous>, transform_indices = @transform_0, window_bounds = array<i64: 8, 128>}, {pipeline_mode = #tpu.pipeline_mode<synchronous>, transform_indices = @transform_1, window_bounds = array<i64: 128, 290>}, {pipeline_mode = #tpu.pipeline_mode<synchronous>, transform_indices = @transform_2, window_bounds = array<i64: 288, 26>}, {pipeline_mode = #tpu.pipeline_mode<synchronous>, transform_indices = @transform_3, window_bounds = array<i64: 8, 256>}]} {
    %c0 = arith.constant 0 : index
    %c0_0 = arith.constant 0 : index
    %0 = vector.load %arg1[%c0, %c0_0] : memref<8x128xbf16, #tpu.memory_space<vmem>>, vector<8x128xbf16>
    %c0_1 = arith.constant 0 : index
    %c0_2 = arith.constant 0 : index
    %1 = vector.load %arg2[%c0_1, %c0_2] : memref<128x290xbf16, #tpu.memory_space<vmem>>, vector<128x290xbf16>
    %cst = arith.constant dense<0.000000e+00> : vector<8x290xf32>
    %2 = tpu.matmul %0, %1, %cst {dimension_numbers = #tpu.dot_dimension_numbers<[1], [0], [0], [1], [0, 0, 1, 1], [], []>} : vector<8x128xbf16>, vector<128x290xbf16>, vector<8x290xf32> -> vector<8x290xf32>
    %3 = vector.extract_strided_slice %2 {offsets = [0, 0], sizes = [8, 128], strides = [1, 1]} : vector<8x290xf32> to vector<8x128xf32>
    %4 = vector.extract_strided_slice %2 {offsets = [0, 128], sizes = [8, 128], strides = [1, 1]} : vector<8x290xf32> to vector<8x128xf32>
    %5 = vector.extract_strided_slice %2 {offsets = [0, 256], sizes = [8, 32], strides = [1, 1]} : vector<8x290xf32> to vector<8x32xf32>
    %cst_3 = arith.constant 0.000000e+00 : f32
    %6 = vector.broadcast %cst_3 : f32 to vector<8x32xf32>
    %7 = arith.maximumf %5, %6 : vector<8x32xf32>
    %8 = vector.extract_strided_slice %2 {offsets = [0, 288], sizes = [8, 2], strides = [1, 1]} : vector<8x290xf32> to vector<8x2xf32>
    %9 = arith.mulf %3, %3 : vector<8x128xf32>
    %10 = arith.mulf %3, %4 : vector<8x128xf32>
    %11 = tpu.concatenate %9, %10, %7 in 1 : vector<8x128xf32>, vector<8x128xf32>, vector<8x32xf32> -> vector<8x288xf32>
    %c0_4 = arith.constant 0 : index
    %c0_5 = arith.constant 0 : index
    %12 = vector.load %arg3[%c0_4, %c0_5] : memref<288x26xf32, #tpu.memory_space<vmem>>, vector<288x26xf32>
    %cst_6 = arith.constant dense<0.000000e+00> : vector<8x26xf32>
    %13 = tpu.matmul %11, %12, %cst_6 {dimension_numbers = #tpu.dot_dimension_numbers<[1], [0], [0], [1], [0, 0, 1, 1], [], []>} : vector<8x288xf32>, vector<288x26xf32>, vector<8x26xf32> -> vector<8x26xf32>
    %14 = vector.extract_strided_slice %13 {offsets = [0, 0], sizes = [8, 8], strides = [1, 1]} : vector<8x26xf32> to vector<8x8xf32>
    %15 = vector.extract_strided_slice %13 {offsets = [0, 8], sizes = [8, 8], strides = [1, 1]} : vector<8x26xf32> to vector<8x8xf32>
    %16 = vector.extract_strided_slice %13 {offsets = [0, 16], sizes = [8, 8], strides = [1, 1]} : vector<8x26xf32> to vector<8x8xf32>
    %17 = vector.extract_strided_slice %13 {offsets = [0, 24], sizes = [8, 2], strides = [1, 1]} : vector<8x26xf32> to vector<8x2xf32>
    %18 = arith.addf %17, %8 : vector<8x2xf32>
    %cst_7 = arith.constant dense<0xFF800000> : vector<8xf32>
    %19 = vector.multi_reduction <maximumf>, %18, %cst_7 [1] : vector<8x2xf32> to vector<8xf32>
    %20 = vector.shape_cast %19 : vector<8xf32> to vector<8x1xf32>
    %21 = vector.broadcast %20 : vector<8x1xf32> to vector<8x2xf32>
    %22 = arith.subf %18, %21 : vector<8x2xf32>
    %23 = math.exp %22 : vector<8x2xf32>
    %cst_8 = arith.constant dense<0.000000e+00> : vector<8xf32>
    %24 = vector.multi_reduction <add>, %23, %cst_8 [1] : vector<8x2xf32> to vector<8xf32>
    %25 = vector.shape_cast %24 : vector<8xf32> to vector<8x1xf32>
    %26 = vector.broadcast %25 : vector<8x1xf32> to vector<8x2xf32>
    %27 = arith.divf %23, %26 : vector<8x2xf32>
    %28 = vector.extract_strided_slice %27 {offsets = [0, 0], sizes = [8, 1], strides = [1, 1]} : vector<8x2xf32> to vector<8x1xf32>
    %29 = vector.extract_strided_slice %3 {offsets = [0, 0], sizes = [8, 16], strides = [1, 1]} : vector<8x128xf32> to vector<8x16xf32>
    %30 = vector.broadcast %28 : vector<8x1xf32> to vector<8x16xf32>
    %31 = arith.mulf %30, %29 : vector<8x16xf32>
    %32 = vector.extract_strided_slice %27 {offsets = [0, 1], sizes = [8, 1], strides = [1, 1]} : vector<8x2xf32> to vector<8x1xf32>
    %33 = vector.extract_strided_slice %3 {offsets = [0, 64], sizes = [8, 16], strides = [1, 1]} : vector<8x128xf32> to vector<8x16xf32>
    %34 = vector.broadcast %32 : vector<8x1xf32> to vector<8x16xf32>
    %35 = arith.mulf %34, %33 : vector<8x16xf32>
    %36 = arith.addf %31, %35 : vector<8x16xf32>
    %cst_9 = arith.constant 1.000000e-24 : f32
    %37 = vector.broadcast %cst_9 : f32 to vector<8x8xf32>
    %38 = arith.maximumf %15, %37 : vector<8x8xf32>
    %39 = math.rsqrt %38 : vector<8x8xf32>
    %40 = arith.mulf %14, %39 : vector<8x8xf32>
    %cst_10 = arith.constant 1.000000e-24 : f32
    %41 = vector.broadcast %cst_10 : f32 to vector<8x8xf32>
    %42 = arith.maximumf %16, %41 : vector<8x8xf32>
    %43 = math.rsqrt %42 : vector<8x8xf32>
    %44 = arith.mulf %40, %43 : vector<8x8xf32>
    %45 = vector.extract_strided_slice %44 {offsets = [0, 1], sizes = [8, 3], strides = [1, 1]} : vector<8x8xf32> to vector<8x3xf32>
    %46 = vector.shape_cast %45 : vector<8x3xf32> to vector<1x8x3xf32>
    %cst_11 = arith.constant dense<0.000000e+00> : vector<1xf32>
    %47 = vector.multi_reduction <add>, %46, %cst_11 [1, 2] : vector<1x8x3xf32> to vector<1xf32>
    %48 = vector.shape_cast %47 : vector<1xf32> to vector<1x1x1xf32>
    %49 = vector.extract %48[0, 0, 0] : f32 from vector<1x1x1xf32>
    %cst_12 = arith.constant 0.0416666679 : f32
    %50 = arith.mulf %49, %cst_12 : f32
    %51 = vector.extract_strided_slice %44 {offsets = [0, 5], sizes = [8, 3], strides = [1, 1]} : vector<8x8xf32> to vector<8x3xf32>
    %52 = vector.shape_cast %51 : vector<8x3xf32> to vector<1x8x3xf32>
    %cst_13 = arith.constant dense<0.000000e+00> : vector<1xf32>
    %53 = vector.multi_reduction <add>, %52, %cst_13 [1, 2] : vector<1x8x3xf32> to vector<1xf32>
    %54 = vector.shape_cast %53 : vector<1xf32> to vector<1x1x1xf32>
    %55 = vector.extract %54[0, 0, 0] : f32 from vector<1x1x1xf32>
    %cst_14 = arith.constant 0.0416666679 : f32
    %56 = arith.mulf %55, %cst_14 : f32
    %cst_15 = arith.constant 1.000000e+00 : f32
    %57 = arith.subf %cst_15, %56 : f32
    %cst_16 = arith.constant 1.000000e+00 : f32
    %58 = vector.broadcast %cst_16 : f32 to vector<8x1xf32>
    %cst_17 = arith.constant 0.000000e+00 : f32
    %59 = vector.broadcast %cst_17 : f32 to vector<8x108xf32>
    %60 = vector.broadcast %50 : f32 to vector<8x1xf32>
    %61 = arith.mulf %60, %58 : vector<8x1xf32>
    %62 = vector.broadcast %57 : f32 to vector<8x1xf32>
    %63 = arith.mulf %62, %58 : vector<8x1xf32>
    %64 = tpu.concatenate %3, %36, %27, %61, %63, %59 in 1 : vector<8x128xf32>, vector<8x16xf32>, vector<8x2xf32>, vector<8x1xf32>, vector<8x1xf32>, vector<8x108xf32> -> vector<8x256xf32>
    %c0_18 = arith.constant 0 : index
    %c0_19 = arith.constant 0 : index
    %65 = vector.load %arg4[%c0_18, %c0_19] : memref<8x256xf32, #tpu.memory_space<vmem>>, vector<8x256xf32>
    tpu.vector_store %arg4[%c0_18, %c0_19], %64 {strides = array<i32>} : memref<8x256xf32, #tpu.memory_space<vmem>>, vector<8x256xf32>,
    return
  }
  func.func @transform_0(%arg0: i32) -> (i32, i32) {
    %c0_i32 = arith.constant 0 : i32
    %c0_i32_0 = arith.constant 0 : i32
    %c0_i32_1 = arith.constant 0 : i32
    return %c0_i32, %c0_i32_0 : i32, i32
  }
  func.func @transform_1(%arg0: i32) -> (i32, i32) {
    %c0_i32 = arith.constant 0 : i32
    %c0_i32_0 = arith.constant 0 : i32
    %c0_i32_1 = arith.constant 0 : i32
    return %c0_i32, %c0_i32_0 : i32, i32
  }
  func.func @transform_2(%arg0: i32) -> (i32, i32) {
    %c0_i32 = arith.constant 0 : i32
    %c0_i32_0 = arith.constant 0 : i32
    %c0_i32_1 = arith.constant 0 : i32
    return %c0_i32, %c0_i32_0 : i32, i32
  }
  func.func @transform_3(%arg0: i32) -> (i32, i32) {
    %c0_i32 = arith.constant 0 : i32
    %c0_i32_0 = arith.constant 0 : i32
    %c0_i32_1 = arith.constant 0 : i32
    return %c0_i32, %c0_i32_0 : i32, i32
  }
}

</mosaic_0001>

<bundles_post_ra>
// kernel: synergy_redundancy_imoe.1
= control target key start
LH: loop header
LB: loop body
LE: loop exit
PB: predicated region body
PF: predicated region fallthrough
CT: control target
= control target key end

     0   :  { %v738_v1 = vmov 0.0   ;;  %v739_v2 = vmov 0   ;;  %vm740_vm0 = vmmov 0   ;;  %v741_v40 = vmov 0.0|0.0   ;;  %s742_s23 = smov 120   ;;  %s744_s24 = smov 112   ;;  %s982_s1 = inlined_call_operand.vmem [shape: bf16[128,290], index: 1, kind: input, shape index: {}]   ;;  %s983_s2 = inlined_call_operand.vmem [shape: f32[288,26], index: 2, kind: input, shape index: {}]   ;;  %s984_s0 = inlined_call_operand.vmem [shape: bf16[8,128], index: 0, kind: input, shape index: {}]   ;;  %s985_s3 = inlined_call_operand.vmem [shape: f32[8,256], index: 3, kind: output, shape index: {}]  }
   0x1   :  { %v700_v0 = vld [vmem:[%s982_s1 + $0x4] ss:$12 sps:$4 sm:$0xff]   ;;  %613 = vmatprep.subr.bf16.mxu1 %v738_v1  ;;  %208 = vmatprep.mubr.bf16.mxu0 %v739_v2  ;;  %v702_v3 = vld [vmem:[%s982_s1] ss:$12 sps:$4 sm:$0xff]   ;;  %v703_v4 = vld [vmem:[%s982_s1 + $0x8] ss:$12 sps:$4 sm:$0xff]  }
   0x2   :  { %629 = vmatprep.mubr.msk.bf16.mxu1 %vm740_vm0, %v738_v1  ;;  %176 = vmatprep.subr.bf16.mxu0 %v700_v0  ;;  %v704_v5 = vld [vmem:[%s982_s1 + $0x1c] ss:$12 sps:$4 sm:$0xff]   ;;  %v706_v6 = vld [vmem:[%s982_s1 + $0x18] ss:$12 sps:$4 sm:$0xff]   ;;  %v707_v7 = vld [vmem:[%s982_s1 + $0x20] ss:$12 sps:$4 sm:$0xff]  }
   0x3   :  { %177 = vmatpush1.bf16.msra.mxu0 %v702_v3  ;;  %614 = vmatpush3.bf16.msra.mxu1 %v703_v4  ;;  %v708_v8 = vld [vmem:[%s982_s1 + $0x34] ss:$12 sps:$4 sm:$0xff]   ;;  %v710_v9 = vld [vmem:[%s982_s1 + $0x30] ss:$12 sps:$4 sm:$0xff]   ;;  %v711_v10 = vld [vmem:[%s982_s1 + $0x38] ss:$12 sps:$4 sm:$0xff]  }
   0x4   :  { %178 = vmatprep.subr.bf16.mxu0 %v704_v5  ;;  %615 = vmatprep.subr.bf16.mxu1 %v738_v1  ;;  %v712_v11 = vld [vmem:[%s982_s1 + $0x4c] ss:$12 sps:$4 sm:$0xff]   ;;  %v714_v12 = vld [vmem:[%s982_s1 + $0x48] ss:$12 sps:$4 sm:$0xff]   ;;  %v715_v13 = vld [vmem:[%s982_s1 + $0x50] ss:$12 sps:$4 sm:$0xff]  }
   0x5   :  { %v716_v14 = vld [vmem:[%s982_s1 + $0x64] ss:$12 sps:$4 sm:$0xff]   ;;  %v718_v15 = vld [vmem:[%s982_s1 + $0x60] ss:$12 sps:$4 sm:$0xff]   ;;  %v719_v16 = vld [vmem:[%s982_s1 + $0x68] ss:$12 sps:$4 sm:$0xff]  }
   0x6   :  { %v720_v17 = vld [vmem:[%s982_s1 + $0x7c] ss:$12 sps:$4 sm:$0xff]   ;;  %v722_v18 = vld [vmem:[%s982_s1 + $0x78] ss:$12 sps:$4 sm:$0xff]   ;;  %v723_v19 = vld [vmem:[%s982_s1 + $0x80] ss:$12 sps:$4 sm:$0xff]  }
   0x7   :  { %179 = vmatpush1.bf16.msra.mxu0 %v706_v6  ;;  %616 = vmatpush3.bf16.msra.mxu1 %v707_v7  ;;  %v724_v20 = vld [vmem:[%s982_s1 + $0x94] ss:$12 sps:$4 sm:$0xff]   ;;  %v726_v21 = vld [vmem:[%s982_s1 + $0x90] ss:$12 sps:$4 sm:$0xff]   ;;  %v727_v22 = vld [vmem:[%s982_s1 + $0x98] ss:$12 sps:$4 sm:$0xff]  }
   0x8   :  { %180 = vmatprep.subr.bf16.mxu0 %v708_v8  ;;  %617 = vmatprep.subr.bf16.mxu1 %v738_v1  ;;  %v728_v23 = vld [vmem:[%s982_s1 + $0xac] ss:$12 sps:$4 sm:$0xff]   ;;  %v276_v24 = vld [vmem:[%s983_s2 + $0x80] sm:$0xff]  ;;  %v730_v26 = vld [vmem:[%s982_s1 + $0xa8] ss:$12 sps:$4 sm:$0xff]   ;;  %vm296_vm1 = vcmask 261120  }
   0x9   :  { %v277_v25 = vld [vmem:[%s983_s2 + $0x88] sm:$0xff]  ;;  %v731_v27 = vld [vmem:[%s982_s1 + $0xb0] ss:$12 sps:$4 sm:$0xff]   ;;  %v260_v29 = vld [vmem:[%s983_s2] sm:$0xff]  ;;  %vm445_vm2 = vcmask 212160   ;;  %vm456_vm3 = vcmask 15360  }
   0xa   :  { %v644_v28 = vpack.c.bf16 %v277_v25, %v276_v24  ;;  %v261_v30 = vld [vmem:[%s983_s2 + $0x8] sm:$0xff]  ;;  %v278_v31 = vld [vmem:[%s983_s2 + $0x90] sm:$0xff]  ;;  %v279_v32 = vld [vmem:[%s983_s2 + $0x98] sm:$0xff]  ;;  %s745_s25 = smov 127   ;;  %s746_s26 = smov 123   ;;  %vm493_vm4 = vcmask 23552  }
   0xb   :  { %181 = vmatpush1.bf16.msra.mxu0 %v710_v9  ;;  %618 = vmatpush3.bf16.msra.mxu1 %v711_v10  ;;  %v15_v33 = vld [vmem:[%s984_s0] sm:$0xf]  ;;  %v646_v34 = vpack.c.bf16 %v261_v30, %v260_v29  ;;  %v648_v35 = vpack.c.bf16 %v279_v32, %v278_v31  ;;  %v262_v36 = vld [vmem:[%s983_s2 + $0x10] sm:$0xff]  ;;  %v263_v37 = vld [vmem:[%s983_s2 + $0x18] sm:$0xff]  ;;  %s749_s0 = smov 64   ;;  %vm525_vm5 = vcmask 130048  }
   0xc   :  { %182 = vmatprep.subr.bf16.mxu0 %v712_v11  ;;  %619 = vmatprep.subr.bf16.mxu1 %v738_v1  ;;  %v280_v38 = vld [vmem:[%s983_s2 + $0xa0] sm:$0xff]  ;;  %v281_v39 = vld [vmem:[%s983_s2 + $0xa8] sm:$0xff]  ;;  %v650_v41 = vpack.c.bf16 %v263_v37, %v262_v36  ;;  %v282_v45 = vld [vmem:[%s983_s2 + $0xb0] sm:$0xff]  ;;  %vm527_vm6 = vcmask 146432   ;;  %vm529_vm7 = vcmask 154624   ;;  %vm531_vm8 = vcmask 162816  }
   0xd   :  { %v652_v42 = vpack.c.bf16 %v281_v39, %v280_v38  ;;  %v264_v43 = vld [vmem:[%s983_s2 + $0x20] sm:$0xff]  ;;  %v265_v44 = vld [vmem:[%s983_s2 + $0x28] sm:$0xff]  ;;  %v283_v46 = vld [vmem:[%s983_s2 + $0xb8] sm:$0xff] }
   0xe   :  { %v654_v47 = vpack.c.bf16 %v265_v44, %v264_v43  ;;  %v656_v48 = vpack.c.bf16 %v283_v46, %v282_v45  ;;  %v266_v49 = vld [vmem:[%s983_s2 + $0x30] sm:$0xff]  ;;  %v267_v50 = vld [vmem:[%s983_s2 + $0x38] sm:$0xff]  ;;  %v284_v51 = vld [vmem:[%s983_s2 + $0xc0] sm:$0xff] }
   0xf   :  { %183 = vmatpush1.bf16.msra.mxu0 %v714_v12  ;;  %620 = vmatpush3.bf16.msra.mxu1 %v715_v13  ;;  %v285_v52 = vld [vmem:[%s983_s2 + $0xc8] sm:$0xff]  ;;  %v658_v53 = vpack.c.bf16 %v267_v50, %v266_v49  ;;  %v268_v55 = vld [vmem:[%s983_s2 + $0x40] sm:$0xff]  ;;  %v286_v57 = vld [vmem:[%s983_s2 + $0xd0] sm:$0xff]  ;;  %v747_v50 = vmov 25  }
  0x10   :  { %184 = vmatprep.subr.bf16.mxu0 %v716_v14  ;;  %621 = vmatprep.subr.bf16.mxu1 %v738_v1  ;;  %v660_v54 = vpack.c.bf16 %v285_v52, %v284_v51  ;;  %v269_v56 = vld [vmem:[%s983_s2 + $0x48] sm:$0xff]  ;;  %v287_v58 = vld [vmem:[%s983_s2 + $0xd8] sm:$0xff]  ;;  %v270_v61 = vld [vmem:[%s983_s2 + $0x50] sm:$0xff]  ;;  %v748_v51 = vmov 24  }
  0x11   :  { %v662_v59 = vpack.c.bf16 %v269_v56, %v268_v55  ;;  %v664_v60 = vpack.c.bf16 %v287_v58, %v286_v57  ;;  %v271_v62 = vld [vmem:[%s983_s2 + $0x58] sm:$0xff]  ;;  %v288_v63 = vld [vmem:[%s983_s2 + $0xe0] sm:$0xff]  ;;  %v289_v0 = vld [vmem:[%s983_s2 + $0xe8] sm:$0xff]  ;;  %698 = vset.pattern.permute.xlu0 %v747_v50  ;;  %699 = vset.pattern.permute.xlu1 %v748_v51 }
  0x12   :  { %v668_v2 = vpack.c.bf16 %v289_v0, %v288_v63  ;;  %v272_v3 = vld [vmem:[%s983_s2 + $0x60] sm:$0xff]  ;;  %v273_v4 = vld [vmem:[%s983_s2 + $0x68] sm:$0xff]  ;;  %v290_v9 = vld [vmem:[%s983_s2 + $0xf0] sm:$0xff] }
  0x13   :  { %185 = vmatpush1.bf16.msra.mxu0 %v718_v15  ;;  %622 = vmatpush3.bf16.msra.mxu1 %v719_v16  ;;  %v670_v5 = vpack.c.bf16 %v273_v4, %v272_v3  ;;  %v292_v6 = vld [vmem:[%s983_s2 + $0x100] sm:$0xff]  ;;  %v293_v7 = vld [vmem:[%s983_s2 + $0x108] sm:$0xff]  ;;  %v291_v10 = vld [vmem:[%s983_s2 + $0xf8] sm:$0xff] }
  0x14   :  { %186 = vmatprep.subr.bf16.mxu0 %v720_v17  ;;  %623 = vmatprep.subr.bf16.mxu1 %v738_v1  ;;  %v677_v8 = vpack.c.bf16 %v293_v7, %v292_v6  ;;  %v672_v11 = vpack.c.bf16 %v291_v10, %v290_v9  ;;  %v274_v12 = vld [vmem:[%s983_s2 + $0x70] sm:$0xff]  ;;  %v275_v13 = vld [vmem:[%s983_s2 + $0x78] sm:$0xff] }
  0x15   :  { %v674_v14 = vpack.c.bf16 %v275_v13, %v274_v12  ;;  %v294_v15 = vld [vmem:[%s983_s2 + $0x110] sm:$0xff]  ;;  %v295_v16 = vld [vmem:[%s983_s2 + $0x118] sm:$0xff]  ;;  %s743_s2 = smov 104  }
  0x16   :  { %v680_v17 = vpack.c.bf16 %v295_v16, %v294_v15 }
  0x17   :  { %187 = vmatpush1.bf16.msra.mxu0 %v722_v18  ;;  %624 = vmatpush3.bf16.msra.mxu1 %v723_v19 }
  0x18   :  { %188 = vmatprep.subr.bf16.mxu0 %v724_v20  ;;  %625 = vmatprep.subr.bf16.mxu1 %v738_v1 }
  0x1b   :  { %189 = vmatpush1.bf16.msra.mxu0 %v726_v21  ;;  %626 = vmatpush3.bf16.msra.mxu1 %v727_v22 }
  0x1c   :  { %190 = vmatprep.subr.bf16.mxu0 %v728_v23  ;;  %627 = vmatprep.subr.bf16.mxu1 %v738_v1 }
  0x1f   :  { %191 = vmatpush1.bf16.msra.mxu0 %v730_v26  ;;  %628 = vmatpush3.bf16.msra.mxu1 %v731_v27 }
  0x20   :  { %645 = vmatprep.subr.bf16.mxu0 %v644_v28  ;;  %676 = vmatprep.subr.bf16.mxu1 %v741_v40 }
  0x22   :  { %209 = vmatmul.mubr.bf16.vlgmr.msra.gmra.mrb[0].mxu0 %v15_v33  ;;  %630 = vmatmul.mubr.bf16.vlgmr.msra.gmra.mrb[0].mxu1 %v15_v33 }
  0x23   :  { %647 = vmatpush3.bf16.msra.mxu0 %v646_v34  ;;  %641 = vmatprep.mubr.msk.f32.mxu1 %vm740_vm0, %v738_v1  ;;  %v666_v1 = vpack.c.bf16 %v271_v62, %v270_v61 }
  0x24   :  { %649 = vmatprep.subr.bf16.mxu0 %v648_v35  ;;  %678 = vmatpush3.bf16.msra.mxu1 %v677_v8 }
  0x25   :  { %679 = vmatprep.subr.bf16.mxu1 %v741_v40 }
  0x27   :  { %651 = vmatpush3.bf16.msra.mxu0 %v650_v41 }
  0x28   :  { %653 = vmatprep.subr.bf16.mxu0 %v652_v42  ;;  %681 = vmatpush3.bf16.msra.mxu1 %v680_v17 }
  0x2b   :  { %655 = vmatpush3.bf16.msra.mxu0 %v654_v47 }
  0x2c   :  { %657 = vmatprep.subr.bf16.mxu0 %v656_v48 }
  0x2f   :  { %659 = vmatpush3.bf16.msra.mxu0 %v658_v53 }
  0x30   :  { %661 = vmatprep.subr.bf16.mxu0 %v660_v54 }
  0x33   :  { %663 = vmatpush3.bf16.msra.mxu0 %v662_v59 }
  0x34   :  { %665 = vmatprep.subr.bf16.mxu0 %v664_v60 }
  0x37   :  { %667 = vmatpush3.bf16.msra.mxu0 %v666_v1 }
  0x38   :  { %669 = vmatprep.subr.bf16.mxu0 %v668_v2 }
  0x3b   :  { %671 = vmatpush3.bf16.msra.mxu0 %v670_v5 }
  0x3c   :  { %673 = vmatprep.subr.bf16.mxu0 %v672_v11 }
  0x3f   :  { %675 = vmatpush3.bf16.msra.mxu0 %v674_v14 }
  0xf5   :  { %v965_v18 = vpop.f32.mrb[0].mxu0  ;;  %v251_v20 = vpop.f32.mrb[0].mxu1 }
  0xf6   :  { %533 = vst [vmem:[%s985_s3] sm:$0xff] %v965_v18  ;;  %v212_v19 = vpop.f32.mrb[1].mxu0  ;;  %v257_v23 = vmax.f32 %v251_v20, 0.0  ;;  %v631_v24 = vpop.f32.mrb[1].mxu1  ;;  %441 = vrot.lane.b32.xlu0 %v251_v20, %s742_s23  ;;  %v258_v27 = vmul.f32 %v965_v18, %v965_v18 }
  0xf7   :  { %v259_v21 = vmul.f32 %v212_v19, %v965_v18  ;;  %v214_v22 = vpop.f32.mrb[2].mxu0  ;;  %v254_v26 = vpop.f32.mrb[2].mxu1 }
  0xf8   :  { %v215_v25 = vpop.f32.mrb[3].mxu0  ;;  %v632_v28 = vpop.f32.mrb[3].mxu1  ;;  %642 = vmatmul.mubr.msk.f32.vlgmr.msra.gmra.mrb[4].mxu1 %vm296_vm1, %v257_v23 }
  0xf9   :  { %364 = vmatprep.mubr.f32.mxu0 %v259_v21 }
  0xfa   :  { %365 = vmatmul.mubr.f32.vlgmr.msra.gmra.mrb[4].mxu0 %v258_v27 }
 0x168   :  { %v442_v35 = vpop.permute.xlu0 %441 }
 0x1cb   :  { %v436_v29 = vpop.f32.mrb[4].mxu1 }
 0x1cc   :  { %v643_v31 = vpop.f32.mrb[5].mxu1 }
 0x1cd   :  { %v605_v30 = vpop.f32.mrb[4].mxu0 }
 0x1ce   :  { %v606_v32 = vpop.f32.mrb[5].mxu0 }
 0x1cf   :  { %v607_v33 = vadd.f32 %v606_v32, %v605_v30 }
 0x1d1   :  { %v437_v34 = vadd.f32 %v607_v33, %v436_v29 }
 0x1d3   :  { %v444_v36 = vadd.f32 %v442_v35, %v437_v34  ;;  %v478_v41 = vmax.f32 %v437_v34, 1e-24 }
 0x1d5   :  { %v446_v37 = vsel %vm445_vm2, %v444_v36, -inf }
 0x1d6   :  { %447 = vmax.xlane.f32.xlu0 %v446_v37 }
 0x263   :  { %v448_v38 = vpop.xlane.xlu0 %447 }
 0x264   :  { %v449_v39 = vsub.f32 %v444_v36, %v448_v38 }
 0x266   :  { %v450_v40 = vmul.f32 1.442695, %v449_v39 }
 0x268   :  { %732 = vpow2.f32 %v450_v40 }
 0x269   :  { %734 = vrsqrt.f32 %v478_v41 }
 0x272   :  { %v733_v42 = vpop.eup %732 }
 0x273   :  { %453 = vrot.lane.b32.xlu1 %v733_v42, %s743_s2  ;;  %v735_v43 = vpop.eup %734 }
 0x277   :  { %481 = vrot.lane.b32.xlu1 %v735_v43, %s742_s23 }
 0x27b   :  { %485 = vrot.lane.b32.xlu1 %v735_v43, %s744_s24 }
 0x2e5   :  { %v454_v44 = vpop.permute.xlu1 %453 }
 0x2e6   :  { %v457_v45 = vsel %vm456_vm3, %v454_v44, 0.0 }
 0x2e7   :  { %458 = vadd.xlane.f32.xlu1 %v457_v45 }
 0x2e9   :  { %v482_v46 = vpop.permute.xlu1 %481 }
 0x2ea   :  { %v484_v47 = vmul.f32 %v482_v46, %v437_v34 }
 0x2ed   :  { %v486_v48 = vpop.permute.xlu1 %485 }
 0x2ee   :  { %v488_v49 = vmul.f32 %v486_v48, %v484_v47 }
 0x2f0   :  { %490 = vrot.lane.b32.xlu0 %v488_v49, %s745_s25 }
 0x2f8   :  { %505 = vrot.lane.b32.xlu1 %v488_v49, %s746_s26 }
 0x362   :  { %v491_v52 = vpop.permute.xlu0 %490 }
 0x363   :  { %v494_v53 = vsel %vm493_vm4, %v491_v52, 0.0 }
 0x364   :  { %495 = vadd.xlane.f32.xlu0 %v494_v53 }
 0x374   :  { %v459_v54 = vpop.xlane.xlu1 %458 }
 0x375   :  { %736 = vrcp.f32 %v459_v54 }
 0x378   :  { %v506_v55 = vpop.permute.xlu1 %505 }
 0x379   :  { %v508_v56 = vsel %vm493_vm4, %v506_v55, 0.0 }
 0x37a   :  { %509 = vadd.xlane.f32.xlu1 %v508_v56 }
 0x37f   :  { %v737_v57 = vpop.eup %736 }
 0x380   :  { %v461_v58 = vmul.f32 %v737_v57, %v733_v42 }
 0x382   :  { %469 = vperm.xlu0 %698, %v461_v58  }
 0x38b   :  { %464 = vperm.xlu1 %699, %v461_v58  }
 0x3f1   :  { %v496_v59 = vpop.xlane.xlu0 %495 }
 0x3f2   :  { %v497_v60 = vrot.slane %v496_v59, 4 }
 0x3f4   :  { %v498_v61 = vadd.f32 %v497_v60, %v496_v59 }
 0x3f6   :  { %v499_v62 = vrot.slane %v498_v61, 2 }
 0x3f8   :  { %v500_v63 = vadd.f32 %v499_v62, %v498_v61 }
 0x3fa   :  { %v501_v0 = vrot.slane %v500_v63, 1 }
 0x3fc   :  { %v502_v1 = vadd.f32 %v501_v0, %v500_v63 }
 0x3fe   :  { %682 = vpush %v502_v1 }
 0x401   :  { %v470_v2 = vpop.permute.xlu0 %469 }
 0x402   :  { %v472_v3 = vmul.f32 %v470_v2, %v965_v18 }
 0x404   :  { %474 = vrot.lane.b32.xlu1 %v472_v3, %s749_s0 }
 0x407   :  { %v510_v4 = vpop.xlane.xlu1 %509 }
 0x408   :  { %v511_v5 = vrot.slane %v510_v4, 4  ;;  %522 = vrot.lane.b32.xlu1 %v461_v58, %s742_s23 }
 0x40a   :  { %v512_v6 = vadd.f32 %v511_v5, %v510_v4 }
 0x40b   :  { %v465_v11 = vpop.permute.xlu1 %464 }
 0x40c   :  { %v513_v7 = vrot.slane %v512_v6, 2  ;;  %v467_v13 = vmul.f32 %v465_v11, %v965_v18 }
 0x40e   :  { %v514_v8 = vadd.f32 %v513_v7, %v512_v6 }
 0x410   :  { %v515_v9 = vrot.slane %v514_v8, 1 }
 0x412   :  { %v516_v10 = vadd.f32 %v515_v9, %v514_v8 }
 0x414   :  { %684 = vpush %v516_v10 }
 0x42f   :  { %s683_s27 = spop %682 }
 0x430   :  { %s504_s30 = smul.f32 0.041666668, %s683_s27 }
 0x432   :  { %v520_v16 = vstv %s504_s30 }
 0x445   :  { %s685_s28 = spop %684 }
 0x446   :  { %s518_s29 = smul.f32 0.041666668, %s685_s28 }
 0x448   :  { %s519_s4 = ssub.f32 1.0, %s518_s29 }
 0x44a   :  { %v521_v19 = vstv %s519_s4 }
 0x476   :  { %v475_v12 = vpop.permute.xlu1 %474 }
 0x477   :  { %v477_v14 = vadd.f32 %v475_v12, %v467_v13 }
 0x47a   :  { %v523_v15 = vpop.permute.xlu1 %522 }
 0x47b   :  { %v526_v17 = vsel %vm525_vm5, %v477_v14, %v523_v15 }
 0x47c   :  { %v528_v20 = vsel %vm527_vm6, %v526_v17, %v520_v16 }
 0x47d   :  { %v530_v21 = vsel %vm529_vm7, %v528_v20, %v521_v19 }
 0x47e   :  { %v532_v22 = vsel %vm531_vm8, %v530_v21, 0.0 }
 0x47f   :  { %534 = vst [vmem:[%s985_s3 + $0x8] sm:$0xff] %v532_v22 }

</bundles_post_ra>
